<compile_context>
chip_gen: v7x
topology: tpu7x:2x2x1
jax: 0.10.0
libtpu: 0.0.40
codegen_flags: <defaults>
</compile_context>

<pallas_src>
import math

import jax
import jax.numpy as jnp
from jax import lax
from jax.experimental import pallas as pl
from jax.experimental.pallas import tpu as pltpu

_LANE = 128       # vreg lane width
_SUBLANE = 8      # vreg sublane height (f32)
_SUB_COLS = 1024  # lane columns processed per inner pass (keeps acc in vregs)


def ctgwp_kernel(w_ref, f_ref, o_ref):
    # w_ref: VMEM (T, 1)      f32 normalized Gaussian weights (constant block).
    # f_ref: VMEM (T, TILE_N) input tile; T on sublanes, flattened B*C on lanes.
    # o_ref: VMEM (1, TILE_N) output tile (lane-dense).
    T, tile_n = f_ref.shape

    # Column sub-tile width (static, trace-time): largest multiple of 128 that
    # divides tile_n and keeps the accumulator small (<= 8 x 1024 f32 = 8 vregs).
    if tile_n % _LANE != 0:
        sub = tile_n
    else:
        sub = _LANE
        for cand in (_SUB_COLS, 896, 768, 640, 512, 384, 256, _LANE):
            if cand <= tile_n and tile_n % cand == 0:
                sub = cand
                break
    n_sub = tile_n // sub

    n_full = T // _SUBLANE          # full sublane-aligned chunks along T
    rem = T % _SUBLANE              # trailing rows (static)

    def sub_body(s, carry):
        c0 = pl.multiple_of(s * sub, sub)

        def chunk_body(k, acc):
            t0 = pl.multiple_of(k * _SUBLANE, _SUBLANE)
            fk = f_ref[pl.ds(t0, _SUBLANE), pl.ds(c0, sub)].astype(jnp.float32)
            wk = w_ref[pl.ds(t0, _SUBLANE), :]        # (8, 1) -> lane-broadcast
            return acc + fk * wk                      # pure VPU FMA, no temporaries

        acc = jnp.zeros((_SUBLANE, sub), jnp.float32)
        acc = lax.fori_loop(0, n_full, chunk_body, acc,
                            unroll=True if n_full <= 16 else 4)

        row = jnp.sum(acc, axis=0, keepdims=True)      # (1, sub) small sublane reduce
        if rem:                                        # static trace-time branch
            fr = f_ref[pl.ds(n_full * _SUBLANE, rem), pl.ds(c0, sub)].astype(jnp.float32)
            wr = w_ref[pl.ds(n_full * _SUBLANE, rem), :]
            row = row + jnp.sum(fr * wr, axis=0, keepdims=True)

        o_ref[:, pl.ds(c0, sub)] = row.astype(o_ref.dtype)
        return carry

    lax.fori_loop(0, n_sub, sub_body, 0)


def _pick_lane_tile(n_pad, t, itemsize, max_block_bytes):
    # n_pad is a multiple of 128: pick the largest multiple-of-128 divisor whose
    # (t x tile) block stays under max_block_bytes (double-buffered working set
    # then fits comfortably on v5e/v6e/v7x).
    best = min(n_pad, _LANE)
    m = _LANE
    while m <= n_pad:
        if n_pad % m == 0 and m * t * itemsize <= max_block_bytes:
            best = m
        m += _LANE
    return best


def ctgwp_forward(F, log_sigma, *, max_block_bytes=4 * 1024 * 1024):
    B, C, T = F.shape
    dtype = F.dtype

    # --- hoisted O(T) weight generation (once, off the per-tile path) ---------
    sigma = jnp.exp(jnp.asarray(log_sigma, jnp.float32)) + 1e-6
    t = jnp.arange(T, dtype=jnp.float32)
    center = (T - 1) / 2.0
    w = jnp.exp(-((t - center) ** 2) / (2.0 * sigma * sigma))
    w = w / jnp.sum(w)
    w2 = w[:, None]                                    # (T, 1) f32

    # --- layout plumbing: reduction axis -> sublanes, flattened B*C -> lanes --
    # TODO(synk): if the producer can emit (B, T, C)/(T, B*C) activations
    # directly, this transpose copy disappears (it is layout plumbing only).
    N = B * C
    f2 = jnp.transpose(F, (2, 0, 1)).reshape(T, N)
    n_pad = ((N + _LANE - 1) // _LANE) * _LANE
    if n_pad != N:
        f2 = jnp.pad(f2, ((0, 0), (0, n_pad - N)))

    tile_n = _pick_lane_tile(n_pad, T, jnp.dtype(dtype).itemsize, max_block_bytes)
    grid = (n_pad // tile_n,)

    out = pl.pallas_call(
        ctgwp_kernel,
        out_shape=jax.ShapeDtypeStruct((1, n_pad), dtype),
        grid_spec=pltpu.PrefetchScalarGridSpec(
            num_scalar_prefetch=0,
            grid=grid,
            in_specs=[
                pl.BlockSpec((T, 1), lambda i: (0, 0)),       # weights: fetched once
                pl.BlockSpec((T, tile_n), lambda i: (0, i)),  # streaming data tiles
            ],
            out_specs=pl.BlockSpec((1, tile_n), lambda i: (0, i)),
        ),
        compiler_params=pltpu.CompilerParams(
            dimension_semantics=("parallel",),        # megacore sharding on v7x
            vmem_limit_bytes=32 * 1024 * 1024,        # blocks sized so 2x-buffered use << this
        ),
    )(w2, f2)

    return out[0, :N].reshape(B, C)


def ctgwp_reference(F, log_sigma):
    T = F.shape[-1]
    sigma = jnp.exp(jnp.asarray(log_sigma, jnp.float32)) + 1e-6
    t = jnp.arange(T, dtype=jnp.float32)
    center = (T - 1) / 2.0
    w = jnp.exp(-((t - center) ** 2) / (2.0 * sigma * sigma))
    w = w / jnp.sum(w)
    return jnp.sum(F.astype(jnp.float32) * w, axis=2).astype(F.dtype)


if __name__ == "__main__":
    # Deterministic parameter init, same as nn.Parameter(log(init_T / 6.0)), init_T = 98.
    init_T = 98
    log_sigma = math.log(init_T / 6.0)

    # Small (B, C, T) input consistent with the module forward; exercises lane padding.
    key = jax.random.PRNGKey(0)
    B, C, T = 2, 4, 16
    F = jax.random.normal(key, (B, C, T), dtype=jnp.float32)

    out = jax.block_until_ready(ctgwp_forward(F, log_sigma))
    ref = ctgwp_reference(F, log_sigma)
    assert out.shape == (B, C)
    assert jnp.allclose(out, ref, atol=1e-5, rtol=1e-5), "mismatch vs reference (small)"

    # Second shape: multi-step grid (tiny max_block_bytes forces 4 tiles) and a
    # T-remainder (27 = 3*8 + 3) to cover the tiled + remainder code paths.
    B2, C2, T2 = 2, 256, 27
    F2 = jax.random.normal(jax.random.PRNGKey(1), (B2, C2, T2), dtype=jnp.float32)
    out2 = jax.block_until_ready(
        ctgwp_forward(F2, log_sigma, max_block_bytes=T2 * 128 * 4))
    ref2 = ctgwp_reference(F2, log_sigma)
    assert out2.shape == (B2, C2)
    assert jnp.allclose(out2, ref2, atol=1e-5, rtol=1e-5), "mismatch vs reference (tiled)"

    print("KERNEL_OK")
</pallas_src>

<mosaic_0001>
module attributes {stable_mosaic.version = 11 : i64} {
  func.func @ctgwp_kernel(%arg0: i32, %arg1: memref<16x1xf32, #tpu.memory_space<vmem>>, %arg2: memref<16x128xf32, #tpu.memory_space<vmem>>, %arg3: memref<1x128xf32, #tpu.memory_space<vmem>>) attributes {dimension_semantics = [#tpu.dimension_semantics<parallel>], iteration_bounds = array<i64: 1>, scalar_prefetch = 0 : i64, scratch_operands = 0 : i64, tpu.core_type = #tpu.core_type<tc>, window_params = [{pipeline_mode = #tpu.pipeline_mode<synchronous>, transform_indices = @transform_0, window_bounds = array<i64: 16, 1>}, {transform_indices = @transform_1, window_bounds = array<i64: 16, 128>}, {transform_indices = @transform_2, window_bounds = array<i64: 1, 128>}]} {
    %c0_i32 = arith.constant 0 : i32
    %c128_i32 = arith.constant 128 : i32
    %0 = arith.muli %c0_i32, %c128_i32 : i32
    %1 = tpu.assume_multiple %0, 128 : i32
    %cst = arith.constant 0.000000e+00 : f32
    %2 = vector.broadcast %cst : f32 to vector<8x128xf32>
    %c0_i32_0 = arith.constant 0 : i32
    %c8_i32 = arith.constant 8 : i32
    %3 = arith.muli %c0_i32_0, %c8_i32 : i32
    %4 = tpu.assume_multiple %3, 8 : i32
    %5 = arith.index_cast %4 : i32 to index
    %6 = arith.index_cast %1 : i32 to index
    %7 = vector.load %arg2[%5, %6] : memref<16x128xf32, #tpu.memory_space<vmem>>, vector<8x128xf32>
    %8 = arith.index_cast %4 : i32 to index
    %c0 = arith.constant 0 : index
    %9 = vector.load %arg1[%8, %c0] : memref<16x1xf32, #tpu.memory_space<vmem>>, vector<8x1xf32>
    %10 = vector.broadcast %9 : vector<8x1xf32> to vector<8x128xf32>
    %11 = arith.mulf %7, %10 : vector<8x128xf32>
    %12 = arith.addf %2, %11 : vector<8x128xf32>
    %c1_i32 = arith.constant 1 : i32
    %c8_i32_1 = arith.constant 8 : i32
    %13 = arith.muli %c1_i32, %c8_i32_1 : i32
    %14 = tpu.assume_multiple %13, 8 : i32
    %15 = arith.index_cast %14 : i32 to index
    %16 = arith.index_cast %1 : i32 to index
    %17 = vector.load %arg2[%15, %16] : memref<16x128xf32, #tpu.memory_space<vmem>>, vector<8x128xf32>
    %18 = arith.index_cast %14 : i32 to index
    %c0_2 = arith.constant 0 : index
    %19 = vector.load %arg1[%18, %c0_2] : memref<16x1xf32, #tpu.memory_space<vmem>>, vector<8x1xf32>
    %20 = vector.broadcast %19 : vector<8x1xf32> to vector<8x128xf32>
    %21 = arith.mulf %17, %20 : vector<8x128xf32>
    %22 = arith.addf %12, %21 : vector<8x128xf32>
    %c2_i32 = arith.constant 2 : i32
    %cst_3 = arith.constant dense<0.000000e+00> : vector<128xf32>
    %23 = vector.multi_reduction <add>, %22, %cst_3 [0] : vector<8x128xf32> to vector<128xf32>
    %24 = vector.shape_cast %23 : vector<128xf32> to vector<1x128xf32>
    %c0_4 = arith.constant 0 : index
    %25 = arith.index_cast %1 : i32 to index
    %26 = vector.load %arg3[%c0_4, %25] : memref<1x128xf32, #tpu.memory_space<vmem>>, vector<1x128xf32>
    tpu.vector_store %arg3[%c0_4, %25], %24 {strides = array<i32>} : memref<1x128xf32, #tpu.memory_space<vmem>>, vector<1x128xf32>,
    %c1_i32_5 = arith.constant 1 : i32
    return
  }
  func.func @transform_0(%arg0: i32) -> (i32, i32) {
    %c0_i32 = arith.constant 0 : i32
    %c0_i32_0 = arith.constant 0 : i32
    %c0_i32_1 = arith.constant 0 : i32
    return %c0_i32, %c0_i32_0 : i32, i32
  }
  func.func @transform_1(%arg0: i32) -> (i32, i32) {
    %c0_i32 = arith.constant 0 : i32
    %c0_i32_0 = arith.constant 0 : i32
    return %c0_i32, %arg0 : i32, i32
  }
  func.func @transform_2(%arg0: i32) -> (i32, i32) {
    %c0_i32 = arith.constant 0 : i32
    %c0_i32_0 = arith.constant 0 : i32
    return %c0_i32, %arg0 : i32, i32
  }
}

</mosaic_0001>

<bundles_post_ra>
// kernel: tpu_custom_call.1
= control target key start
LH: loop header
LB: loop body
LE: loop exit
PB: predicated region body
PF: predicated region fallthrough
CT: control target
= control target key end

     0   :  { %s127_s0 = inlined_call_operand.vmem [shape: f32[16,1], index: 0, kind: input, shape index: {}]   ;;  %s128_s1 = inlined_call_operand.vmem [shape: f32[16,128], index: 1, kind: input, shape index: {}]   ;;  %s129_s2 = inlined_call_operand.hbm [shape: f32[1,128], index: 2, kind: output, shape index: {}]  }
   0x1   :  { %v15_v0 = vld [vmem:[%s127_s0] sm:$0xff] }
   0x2   :  { %7 = vsyncpa [#allocation3], 0  ;;  %v86_v1 = vmov 0   ;;  %v58_v2 = vld [vmem:[%s127_s0 + $0x8] sm:$0xff]  ;;  %v14_v4 = vld [vmem:[%s128_s1] sm:$0xff]  ;;  %s87_s17 = smov [#allocation2]  }
   0x3   :  { %61 = vset.pattern.permute.xlu0 %v86_v1  ;;  %v57_v5 = vld [vmem:[%s128_s1 + $0x8] sm:$0xff]  ;;  %s48_s0 = sshll.u32 %s87_s17, 4  ;;  %s49_s0 = int_to_ptr.vmem [resolvable:$true] %s48_s0 }
   0x4   :  { %18 = vperm.xlu0 %61, %v15_v0   ;;  %s62_s18 = scalar_lea.vmem %s49_s0, 16  ;;  %s66_s19 = scalar_lea.vmem %s49_s0, 32 }
   0x5   :  { %p63_p0 = scmp.ne.s32.totalorder %s49_s0, %s62_s18  ;;  %p67_p1 = scmp.lt.s32.totalorder %s49_s0, %s49_s0 }
   0x6   :  { %p68_p2 = scmp.lt.s32.totalorder %s66_s19, %s62_s18 }
   0x8   :  { %30 = vperm.xlu0 %61, %v58_v2   ;;  %p69_p3 = por %p68_p2, %p67_p1 }
   0xa   :  { %p70_p4 = pnand %p69_p3, %p63_p0 }
  0x83   :  { %v19_v3 = vpop.permute.xlu0 %18 }
  0x84   :  { %v21_v7 = vmul.f32 %v19_v3, %v14_v4 }
  0x87   :  { %v31_v6 = vpop.permute.xlu0 %30 }
  0x88   :  { %v33_v8 = vmul.f32 %v57_v5, %v31_v6 }
  0x8a   :  { %v34_v9 = vadd.f32 %v33_v8, %v21_v7 }
  0x8c   :  { %v35_v10 = vrot.slane %v34_v9, 4 }
  0x8e   :  { %v36_v11 = vadd.f32 %v35_v10, %v34_v9 }
  0x90   :  { %v37_v12 = vrot.slane %v36_v11, 2 }
  0x92   :  { %v38_v13 = vadd.f32 %v37_v12, %v36_v11 }
  0x94   :  { %v39_v14 = vrot.slane %v38_v13, 1 }
  0x96   :  { %v40_v15 = vadd.f32 %v39_v14, %v38_v13 }
  0x98   :  { %41 = vst [vmem:[#allocation2] sm:$0x1] %v40_v15 }
  0x99   :  { %73 = shalt.err (!%p70_p4)
}
  0x9a   :  { %s74_s21 = scalar_lea.hbm %s129_s2, 16 }
  0x9b   :  { %p75_p5 = scmp.ne.s32.totalorder %s129_s2, %s74_s21  ;;  %p78_p6 = scmp.lt.u32.totalorder %s74_s21, %s129_s2 }
  0x9d   :  { %p80_p7 = pnand %p78_p6, %p75_p5 }
  0x9f   :  { %83 = shalt.err (!%p80_p7)
}
  0xa0   :  { %51 = dma.vmem_to_hbm [thread:$0]  %s49_s0, 16, %s129_s2, [#allocation3]  }
  0xa1   :  { %84 = dma.done.wait [#allocation3], 16  }
  0xa2   :  { %85 = vsyncadd [#allocation3], 4294967280 }
  0xa3   :  { %55 = vsyncpa [#allocation3], 1 }

</bundles_post_ra>
